<compile_context>
chip_gen: v7x
topology: tpu7x:2x2x1
jax: 0.10.0
libtpu: 0.0.40
codegen_flags: <defaults>
</compile_context>

<pallas_src>
import jax
import jax.numpy as jnp
from jax.experimental import pallas as pl
from jax.experimental.pallas import tpu as pltpu

# ---- small, module-consistent dims (original: 1000->512, ENT->512, 1024->{1,U}) ----
BATCH = 8
IMG_DIM = 256      # image feature dim (orig 1000)
ENT_DIM = 64       # len(encoder.categories_[0]) (synthetic)
HIDDEN = 256       # per-branch projection dim (orig 512); combined = 2*HIDDEN
N_UNITS = 32       # len(allowed_units) (synthetic)

OUT_PAD = 128      # 1 (value) + N_UNITS (32) = 33, padded to a lane-dense 128


def multimodal_kernel(img_ref, ent_ref, w_img_ref, w_ent_ref, b_ref, out_ref):
    # Two bf16 MXU dots (K=256 and K=64) accumulating in f32, one f32 bias add,
    # one unmasked lane-dense (B, 128) store.
    acc = jnp.dot(img_ref[...].astype(jnp.bfloat16), w_img_ref[...],
                  preferred_element_type=jnp.float32)
    acc += jnp.dot(ent_ref[...].astype(jnp.bfloat16), w_ent_ref[...],
                   preferred_element_type=jnp.float32)
    out_ref[...] = acc + b_ref[...]


def pack_params(params):
    """Compose the two linear stages into one affine map, in f32, cast bf16 once."""
    (w_img, b_img, w_ent, b_ent, w_val, b_val, w_unit, b_unit) = params

    # Fused head weight/bias in a lane-dense OUT_PAD layout:
    # column 0 = value head, columns 1..N_UNITS = unit head, rest zero.
    w_head = jnp.zeros((2 * HIDDEN, OUT_PAD), jnp.float32)
    w_head = w_head.at[:, 0:1].set(w_val)
    w_head = w_head.at[:, 1:1 + N_UNITS].set(w_unit)
    b_head = jnp.zeros((1, OUT_PAD), jnp.float32)
    b_head = b_head.at[:, 0:1].set(b_val)
    b_head = b_head.at[:, 1:1 + N_UNITS].set(b_unit)

    w_head_top = w_head[:HIDDEN, :]      # rows fed by the image branch
    w_head_bot = w_head[HIDDEN:, :]      # rows fed by the entity branch

    # Composed weights (f32 composition, single bf16 cast) and composed bias (f32).
    w_img_comp = (w_img @ w_head_top).astype(jnp.bfloat16)           # (IMG_DIM, 128)
    w_ent_comp = (w_ent @ w_head_bot).astype(jnp.bfloat16)           # (ENT_DIM, 128)
    b_comp = b_img @ w_head_top + b_ent @ w_head_bot + b_head        # (1, 128) f32

    return (w_img_comp, w_ent_comp, b_comp)


def multimodal_forward(image_features, entity_features, packed):
    w_img_comp, w_ent_comp, b_comp = packed
    B = image_features.shape[0]

    vmem = pltpu.MemorySpace.VMEM
    out = pl.pallas_call(
        multimodal_kernel,
        out_shape=jax.ShapeDtypeStruct((B, OUT_PAD), jnp.float32),
        in_specs=[pl.BlockSpec(memory_space=vmem)] * 5,
        out_specs=pl.BlockSpec(memory_space=vmem),
    )(image_features, entity_features, w_img_comp, w_ent_comp, b_comp)

    value_out = out[:, 0:1]
    unit_out = out[:, 1:1 + N_UNITS]
    return value_out, unit_out


def init_params(key):
    """Deterministic synthetic parameters (PyTorch Linear semantics, pre-transposed to (in, out))."""
    ks = jax.random.split(key, 8)
    w_img = jax.random.normal(ks[0], (IMG_DIM, HIDDEN), jnp.float32) * 0.02
    b_img = jax.random.normal(ks[1], (1, HIDDEN), jnp.float32) * 0.02
    w_ent = jax.random.normal(ks[2], (ENT_DIM, HIDDEN), jnp.float32) * 0.02
    b_ent = jax.random.normal(ks[3], (1, HIDDEN), jnp.float32) * 0.02
    w_val = jax.random.normal(ks[4], (2 * HIDDEN, 1), jnp.float32) * 0.02
    b_val = jax.random.normal(ks[5], (1, 1), jnp.float32) * 0.02
    w_unit = jax.random.normal(ks[6], (2 * HIDDEN, N_UNITS), jnp.float32) * 0.02
    b_unit = jax.random.normal(ks[7], (1, N_UNITS), jnp.float32) * 0.02
    return (w_img, b_img, w_ent, b_ent, w_val, b_val, w_unit, b_unit)


def reference_forward(image_features, entity_features, params):
    """Pure-JAX f32 reference matching the PyTorch module exactly."""
    (w_img, b_img, w_ent, b_ent, w_val, b_val, w_unit, b_unit) = params
    image_out = image_features @ w_img + b_img
    entity_out = entity_features @ w_ent + b_ent
    combined = jnp.concatenate([image_out, entity_out], axis=1)
    return combined @ w_val + b_val, combined @ w_unit + b_unit


if __name__ == "__main__":
    key = jax.random.PRNGKey(0)
    k_img, k_ent, k_params = jax.random.split(key, 3)

    image_features = jax.random.normal(k_img, (BATCH, IMG_DIM), jnp.float32)
    entity_features = jax.random.normal(k_ent, (BATCH, ENT_DIM), jnp.float32)
    params = init_params(k_params)
    packed = pack_params(params)

    val_out, unit_out = multimodal_forward(image_features, entity_features, packed)
    jax.block_until_ready((val_out, unit_out))

    val_ref, unit_ref = reference_forward(image_features, entity_features, params)
    assert val_out.shape == (BATCH, 1) and unit_out.shape == (BATCH, N_UNITS)
    # Tolerance accounts for the single bf16 cast of inputs/composed weights
    # (f32 composition, f32 accumulation, f32 bias add preserved).
    assert jnp.allclose(val_out, val_ref, atol=2e-2, rtol=2e-2)
    assert jnp.allclose(unit_out, unit_ref, atol=2e-2, rtol=2e-2)

    print("KERNEL_OK")
</pallas_src>

<mosaic_0001>
module attributes {stable_mosaic.version = 11 : i64} {
  func.func @multimodal_kernel(%arg0: memref<8x256xf32, #tpu.memory_space<vmem>>, %arg1: memref<8x64xf32, #tpu.memory_space<vmem>>, %arg2: memref<256x128xbf16, #tpu.memory_space<vmem>>, %arg3: memref<64x128xbf16, #tpu.memory_space<vmem>>, %arg4: memref<1x128xf32, #tpu.memory_space<vmem>>, %arg5: memref<8x128xf32, #tpu.memory_space<vmem>>) attributes {dimension_semantics = [], scalar_prefetch = 0 : i64, scratch_operands = 0 : i64, tpu.core_type = #tpu.core_type<tc>} {
    %c0 = arith.constant 0 : index
    %c0_0 = arith.constant 0 : index
    %0 = vector.load %arg0[%c0, %c0_0] : memref<8x256xf32, #tpu.memory_space<vmem>>, vector<8x256xf32>
    %1 = arith.truncf %0 : vector<8x256xf32> to vector<8x256xbf16>
    %c0_1 = arith.constant 0 : index
    %c0_2 = arith.constant 0 : index
    %2 = vector.load %arg2[%c0_1, %c0_2] : memref<256x128xbf16, #tpu.memory_space<vmem>>, vector<256x128xbf16>
    %cst = arith.constant dense<0.000000e+00> : vector<8x128xf32>
    %3 = tpu.matmul %1, %2, %cst {dimension_numbers = #tpu.dot_dimension_numbers<[1], [0], [0], [1], [0, 0, 1, 1], [], []>} : vector<8x256xbf16>, vector<256x128xbf16>, vector<8x128xf32> -> vector<8x128xf32>
    %c0_3 = arith.constant 0 : index
    %c0_4 = arith.constant 0 : index
    %4 = vector.load %arg1[%c0_3, %c0_4] : memref<8x64xf32, #tpu.memory_space<vmem>>, vector<8x64xf32>
    %5 = arith.truncf %4 : vector<8x64xf32> to vector<8x64xbf16>
    %c0_5 = arith.constant 0 : index
    %c0_6 = arith.constant 0 : index
    %6 = vector.load %arg3[%c0_5, %c0_6] : memref<64x128xbf16, #tpu.memory_space<vmem>>, vector<64x128xbf16>
    %cst_7 = arith.constant dense<0.000000e+00> : vector<8x128xf32>
    %7 = tpu.matmul %5, %6, %cst_7 {dimension_numbers = #tpu.dot_dimension_numbers<[1], [0], [0], [1], [0, 0, 1, 1], [], []>} : vector<8x64xbf16>, vector<64x128xbf16>, vector<8x128xf32> -> vector<8x128xf32>
    %8 = arith.addf %3, %7 : vector<8x128xf32>
    %c0_8 = arith.constant 0 : index
    %c0_9 = arith.constant 0 : index
    %9 = vector.load %arg4[%c0_8, %c0_9] : memref<1x128xf32, #tpu.memory_space<vmem>>, vector<1x128xf32>
    %10 = vector.broadcast %9 : vector<1x128xf32> to vector<8x128xf32>
    %11 = arith.addf %8, %10 : vector<8x128xf32>
    %c0_10 = arith.constant 0 : index
    %c0_11 = arith.constant 0 : index
    %12 = vector.load %arg5[%c0_10, %c0_11] : memref<8x128xf32, #tpu.memory_space<vmem>>, vector<8x128xf32>
    tpu.vector_store %arg5[%c0_10, %c0_11], %11 {strides = array<i32>} : memref<8x128xf32, #tpu.memory_space<vmem>>, vector<8x128xf32>,
    return
  }
}

</mosaic_0001>

<bundles_post_ra>
// kernel: tpu_custom_call.1
= control target key start
LH: loop header
LB: loop body
LE: loop exit
PB: predicated region body
PF: predicated region fallthrough
CT: control target
= control target key end

     0   :  { %10 = vsyncpa [#allocation3], 0  ;;  %s659_s0 = inlined_call_operand.hbm [shape: f32[8,256], index: 0, kind: input, shape index: {}]   ;;  %s660_s1 = inlined_call_operand.hbm [shape: f32[8,64], index: 1, kind: input, shape index: {}]   ;;  %s661_s2 = inlined_call_operand.hbm [shape: bf16[256,128], index: 2, kind: input, shape index: {}]   ;;  %s662_s3 = inlined_call_operand.hbm [shape: bf16[64,128], index: 3, kind: input, shape index: {}]   ;;  %s663_s4 = inlined_call_operand.vmem [shape: f32[1,128], index: 4, kind: input, shape index: {}]   ;;  %s664_s5 = inlined_call_operand.hbm [shape: f32[8,128], index: 5, kind: output, shape index: {}]  }
   0x1   :  { %11 = vsyncpa [#allocation6], 0 }
   0x2   :  { %12 = vsyncpa [#allocation9], 0 }
   0x3   :  { %13 = vsyncpa [#allocation4], 0  ;;  %s557_s18 = smov [#allocation5]   ;;  %s558_s20 = smov [#allocation2]  }
   0x4   :  { %s30_s19 = sshll.u32 %s557_s18, 4  ;;  %s20_s21 = sshll.u32 %s558_s20, 4  ;;  %s31_s19 = int_to_ptr.vmem [resolvable:$true] %s30_s19  ;;  %s21_s21 = int_to_ptr.vmem [resolvable:$true] %s20_s21 }
   0x5   :  { %s439_s24 = scalar_lea.hbm %s660_s1, 128 }
   0x6   :  { %p440_p0 = scmp.ne.s32.totalorder %s660_s1, %s439_s24  ;;  %p443_p1 = scmp.lt.u32.totalorder %s439_s24, %s660_s1 }
   0x8   :  { %p445_p2 = pnand %p443_p1, %p440_p0 }
   0xa   :  { %448 = shalt.err (!%p445_p2)
}
   0xb   :  { %s449_s29 = scalar_lea.vmem %s31_s19, 128  ;;  %p454_p4 = scmp.lt.s32.totalorder %s31_s19, %s31_s19 }
   0xc   :  { %p450_p3 = scmp.ne.s32.totalorder %s31_s19, %s449_s29  ;;  %p455_p5 = scmp.lt.s32.totalorder %s449_s29, %s449_s29 }
   0xe   :  { %p456_p6 = por %p455_p5, %p454_p4 }
  0x10   :  { %p457_p7 = pnand %p456_p6, %p450_p3 }
  0x12   :  { %460 = shalt.err (!%p457_p7)
}
  0x13   :  { %33 = dma.hbm_to_vmem [thread:$0]  %s660_s1, 128, %s31_s19, [#allocation6]  }
  0x14   :  { %s461_s9 = scalar_lea.hbm %s659_s0, 256 }
  0x15   :  { %p462_p8 = scmp.ne.s32.totalorder %s659_s0, %s461_s9  ;;  %p465_p9 = scmp.lt.u32.totalorder %s461_s9, %s659_s0 }
  0x17   :  { %p467_p10 = pnand %p465_p9, %p462_p8 }
  0x19   :  { %470 = shalt.err (!%p467_p10)
}
  0x1a   :  { %s471_s14 = scalar_lea.vmem %s21_s21, 256  ;;  %p476_p12 = scmp.lt.s32.totalorder %s21_s21, %s21_s21 }
  0x1b   :  { %p472_p11 = scmp.ne.s32.totalorder %s21_s21, %s471_s14  ;;  %p477_p13 = scmp.lt.s32.totalorder %s471_s14, %s471_s14 }
  0x1d   :  { %p478_p0 = por %p477_p13, %p476_p12 }
  0x1f   :  { %p479_p1 = pnand %p478_p0, %p472_p11 }
  0x21   :  { %482 = shalt.err (!%p479_p1)
}
  0x22   :  { %23 = dma.hbm_to_vmem [thread:$0]  %s659_s0, 256, %s21_s21, [#allocation3]  }
  0x23   :  { %s559_s16 = smov [#allocation7]   ;;  %s483_s20 = scalar_lea.hbm %s661_s2, 2048 }
  0x24   :  { %s39_s17 = sshll.u32 %s559_s16, 4  ;;  %p484_p2 = scmp.ne.s32.totalorder %s661_s2, %s483_s20  ;;  %s40_s17 = int_to_ptr.vmem [resolvable:$true] %s39_s17 }
  0x25   :  { %p487_p3 = scmp.lt.u32.totalorder %s483_s20, %s661_s2 }
  0x27   :  { %p489_p4 = pnand %p487_p3, %p484_p2 }
  0x29   :  { %492 = shalt.err (!%p489_p4)
}
  0x2a   :  { %s493_s26 = scalar_lea.vmem %s40_s17, 2048  ;;  %p498_p6 = scmp.lt.s32.totalorder %s40_s17, %s40_s17 }
  0x2b   :  { %p494_p5 = scmp.ne.s32.totalorder %s40_s17, %s493_s26  ;;  %p499_p7 = scmp.lt.s32.totalorder %s493_s26, %s493_s26 }
  0x2d   :  { %p500_p8 = por %p499_p7, %p498_p6 }
  0x2f   :  { %p501_p9 = pnand %p500_p8, %p494_p5 }
  0x31   :  { %504 = shalt.err (!%p501_p9)
}
  0x32   :  { %s560_s0 = smov 64   ;;  %s561_s21 = smov 4  }
  0x33   :  { %45 = dma.hbm_to_vmem [thread:$0]  %s661_s2, 2048, %s40_s17, [#allocation6], %s560_s0, %s560_s0, %s561_s21  }
  0x34   :  { %s562_s29 = smov [#allocation8]   ;;  %s505_s8 = scalar_lea.hbm %s662_s3, 512 }
  0x35   :  { %s51_s30 = sshll.u32 %s562_s29, 4  ;;  %p506_p10 = scmp.ne.s32.totalorder %s662_s3, %s505_s8  ;;  %s52_s30 = int_to_ptr.vmem [resolvable:$true] %s51_s30 }
  0x36   :  { %p509_p11 = scmp.lt.u32.totalorder %s505_s8, %s662_s3 }
  0x38   :  { %p511_p12 = pnand %p509_p11, %p506_p10 }
  0x3a   :  { %514 = shalt.err (!%p511_p12)
}
  0x3b   :  { %s515_s13 = scalar_lea.vmem %s52_s30, 512  ;;  %p520_p0 = scmp.lt.s32.totalorder %s52_s30, %s52_s30 }
  0x3c   :  { %p516_p13 = scmp.ne.s32.totalorder %s52_s30, %s515_s13  ;;  %p521_p1 = scmp.lt.s32.totalorder %s515_s13, %s515_s13 }
  0x3e   :  { %p522_p2 = por %p521_p1, %p520_p0 }
  0x40   :  { %p523_p3 = pnand %p522_p2, %p516_p13 }
  0x42   :  { %526 = shalt.err (!%p523_p3)
}
  0x43   :  { %57 = dma.hbm_to_vmem [thread:$0]  %s662_s3, 512, %s52_s30, [#allocation9], %s560_s0, %s560_s0, %s561_s21  }
  0x44   :  { %549 = dma.done.wait [#allocation3], 256  }
  0x45   :  { %550 = vsyncadd [#allocation3], 4294967040 }
  0x46   :  { %551 = dma.done.wait [#allocation6], 2176  }
  0x47   :  { %552 = vsyncadd [#allocation6], 4294965120 }
  0x48   :  { %553 = dma.done.wait [#allocation9], 512  }
  0x49   :  { %554 = vsyncadd [#allocation9], 4294966784  ;;  %v563_v0 = vmov 0.0   ;;  %vm564_vm0 = vmmov 0   ;;  %v419_v1 = vld [vmem:[#allocation7 + $0x40] sm:$0xff]   ;;  %v421_v3 = vld [vmem:[#allocation7 + $0x48] sm:$0xff]  }
  0x4a   :  { %398 = vmatprep.subr.bf16.mxu0 %v563_v0  ;;  %406 = vmatprep.mubr.msk.bf16.mxu0 %vm564_vm0, %v563_v0  ;;  %v420_v2 = vld [vmem:[#allocation7] sm:$0xff]   ;;  %v422_v4 = vld [vmem:[#allocation7 + $0x8] sm:$0xff]   ;;  %v423_v5 = vld [vmem:[#allocation7 + $0x50] sm:$0xff]   ;;  %vm143_vm1 = vcmask 523264   ;;  %s565_s15 = smov [#allocation10]  }
  0x4b   :  { %376 = vmatprep.subr.bf16.mxu1 %v419_v1  ;;  %v424_v6 = vld [vmem:[#allocation7 + $0x10] sm:$0xff]   ;;  %v425_v7 = vld [vmem:[#allocation7 + $0x58] sm:$0xff]   ;;  %v428_v8 = vld [vmem:[#allocation8] sm:$0xff]   ;;  %s338_s16 = sshll.u32 %s565_s15, 4  ;;  %s339_s16 = int_to_ptr.vmem [resolvable:$true] %s338_s16 }
  0x4c   :  { %377 = vmatpush3.bf16.msra.mxu1 %v420_v2  ;;  %v426_v9 = vld [vmem:[#allocation7 + $0x18] sm:$0xff]   ;;  %v427_v10 = vld [vmem:[#allocation7 + $0x60] sm:$0xff]   ;;  %399 = vmatpush3.bf16.msra.mxu0 %v428_v8  ;;  %v431_v11 = vld [vmem:[#allocation8 + $0x8] sm:$0xff]   ;;  %s527_s17 = scalar_lea.vmem %s339_s16, 128  ;;  %p532_p5 = scmp.lt.s32.totalorder %s339_s16, %s339_s16 }
  0x4d   :  { %378 = vmatprep.subr.bf16.mxu1 %v421_v3  ;;  %400 = vmatprep.subr.bf16.mxu0 %v563_v0  ;;  %v429_v12 = vld [vmem:[#allocation7 + $0x20] sm:$0xff]   ;;  %v434_v13 = vld [vmem:[#allocation8 + $0x10] sm:$0xff]   ;;  %v430_v14 = vld [vmem:[#allocation7 + $0x68] sm:$0xff]   ;;  %p528_p4 = scmp.ne.s32.totalorder %s339_s16, %s527_s17  ;;  %p533_p6 = scmp.lt.s32.totalorder %s527_s17, %s527_s17 }
  0x4e   :  { %v432_v15 = vld [vmem:[#allocation7 + $0x28] sm:$0xff]   ;;  %v437_v16 = vld [vmem:[#allocation8 + $0x18] sm:$0xff]   ;;  %v433_v17 = vld [vmem:[#allocation7 + $0x70] sm:$0xff]  }
  0x4f   :  { %v74_v18 = vld [vmem:[#allocation2 + $0x8] sm:$0xff]  ;;  %v109_v19 = vld [vmem:[#allocation5] sm:$0xff]  ;;  %v73_v25 = vld [vmem:[#allocation2] sm:$0xff]  ;;  %p534_p7 = por %p533_p6, %p532_p5 }
  0x50   :  { %379 = vmatpush3.bf16.msra.mxu1 %v422_v4  ;;  %401 = vmatpush3.bf16.msra.mxu0 %v431_v11  ;;  %v76_v20 = vpack.c.bf16 %v74_v18, %v74_v18  ;;  %v110_v21 = vpack.c.bf16 %v109_v19, %v109_v19  ;;  %v435_v22 = vld [vmem:[#allocation7 + $0x30] sm:$0xff]   ;;  %v436_v23 = vld [vmem:[#allocation7 + $0x78] sm:$0xff]   ;;  %v75_v26 = vpack.c.bf16 %v73_v25, %v73_v25  ;;  %v370_v36 = vld [vmem:[%s663_s4] ss:$0 sm:$0xff] }
  0x51   :  { %380 = vmatprep.subr.bf16.mxu1 %v423_v5  ;;  %402 = vmatprep.subr.bf16.mxu0 %v563_v0  ;;  %v438_v24 = vld [vmem:[#allocation7 + $0x38] sm:$0xff]   ;;  %p535_p8 = pnand %p534_p7, %p528_p4 }
  0x52   :  { %315 = vmatprep.mubr.bf16.mxu1 %v76_v20 }
  0x54   :  { %381 = vmatpush3.bf16.msra.mxu1 %v424_v6  ;;  %403 = vmatpush3.bf16.msra.mxu0 %v434_v13 }
  0x55   :  { %382 = vmatprep.subr.bf16.mxu1 %v425_v7  ;;  %404 = vmatprep.subr.bf16.mxu0 %v563_v0 }
  0x58   :  { %383 = vmatpush3.bf16.msra.mxu1 %v426_v9  ;;  %405 = vmatpush3.bf16.msra.mxu0 %v437_v16 }
  0x59   :  { %384 = vmatprep.subr.bf16.mxu1 %v427_v10 }
  0x5b   :  { %407 = vmatmul.mubr.msk.bf16.vlgmr.msra.gmra.mrb[0].mxu0 %vm143_vm1, %v110_v21 }
  0x5c   :  { %385 = vmatpush3.bf16.msra.mxu1 %v429_v12 }
  0x5d   :  { %386 = vmatprep.subr.bf16.mxu1 %v430_v14 }
  0x60   :  { %387 = vmatpush3.bf16.msra.mxu1 %v432_v15 }
  0x61   :  { %388 = vmatprep.subr.bf16.mxu1 %v433_v17 }
  0x64   :  { %389 = vmatpush3.bf16.msra.mxu1 %v435_v22 }
  0x65   :  { %390 = vmatprep.subr.bf16.mxu1 %v436_v23 }
  0x68   :  { %391 = vmatpush3.bf16.msra.mxu1 %v438_v24 }
  0x6b   :  { %316 = vmatmul.mubr.bf16.vlgmr.msra.gmra.mrb[0].mxu1 %v75_v26 }
 0x12e   :  { %v181_v27 = vpop.f32.mrb[0].mxu0 }
 0x12f   :  { %v408_v28 = vpop.f32.mrb[1].mxu0 }
 0x130   :  { %v184_v29 = vpop.f32.mrb[2].mxu0 }
 0x131   :  { %v409_v30 = vpop.f32.mrb[3].mxu0 }
 0x13e   :  { %v392_v31 = vpop.f32.mrb[0].mxu1 }
 0x13f   :  { %v393_v32 = vpop.f32.mrb[1].mxu1 }
 0x140   :  { %v394_v33 = vadd.f32 %v393_v32, %v392_v31  ;;  %v395_v34 = vpop.f32.mrb[2].mxu1 }
 0x141   :  { %v396_v35 = vpop.f32.mrb[3].mxu1 }
 0x142   :  { %v318_v37 = vadd.f32 %v394_v33, %v181_v27 }
 0x144   :  { %v330_v38 = vadd.f32 %v370_v36, %v318_v37 }
 0x146   :  { %331 = vst [vmem:[#allocation10] sm:$0xff] %v330_v38 }
 0x147   :  { %538 = shalt.err (!%p535_p8)
}
 0x148   :  { %s539_s20 = scalar_lea.hbm %s664_s5, 128 }
 0x149   :  { %p540_p9 = scmp.ne.s32.totalorder %s664_s5, %s539_s20  ;;  %p543_p10 = scmp.lt.u32.totalorder %s539_s20, %s664_s5 }
 0x14b   :  { %p545_p11 = pnand %p543_p10, %p540_p9 }
 0x14d   :  { %548 = shalt.err (!%p545_p11)
}
 0x14e   :  { %341 = dma.vmem_to_hbm [thread:$0]  %s339_s16, 128, %s664_s5, [#allocation4]  }
 0x14f   :  { %555 = dma.done.wait [#allocation4], 128  }
 0x150   :  { %556 = vsyncadd [#allocation4], 4294967168 }
 0x151   :  { %345 = vsyncpa [#allocation3], 1 }
 0x152   :  { %346 = vsyncpa [#allocation6], 1 }
 0x153   :  { %347 = vsyncpa [#allocation9], 1 }
 0x154   :  { %348 = vsyncpa [#allocation4], 1 }

</bundles_post_ra>
